<compile_context>
chip_gen: v6e
topology: v6e:2x2x1
jax: 0.10.0
libtpu: 0.0.40
codegen_flags: <defaults>
</compile_context>

<pallas_src>
import jax
import jax.numpy as jnp
from jax.experimental import pallas as pl
from jax.experimental.pallas import tpu as pltpu
import numpy as np


def _round_up(x, m):
    return ((x + m - 1) // m) * m


def _maybe_pad(x, pads):
    if all(p == (0, 0) for p in pads):
        return x
    return jnp.pad(x, pads)


def _vmem_budget_bytes():
    """Generation-aware VMEM budget (~65% of physical per-core VMEM)."""
    cap = None
    try:
        info = pltpu.get_tpu_info()
        cap = getattr(info, "vmem_capacity_bytes", None)
    except Exception:
        cap = None
    if not cap or cap <= 0:
        cap = 64 * 1024 * 1024  # conservative fallback (v7x per-core VMEM)
    return int(cap * 0.65)


def _choose_b_tile(bs, s_pad, l_pad, d_pad, c_pad, bert_bytes, out_bytes,
                   budget_bytes):
    """Largest divisor of bs whose working set fits the VMEM budget.

    Accounting per batch element (double buffers counted where the pipeline
    allocates them):
      * bert tile (input dtype), 2 buffers
      * output tile (out dtype), 2 buffers
      * int32 bounds tile, lane-padded to 128, 2 buffers
      * mask intermediate (f32 build + bf16 matmul operand)
      * span-average intermediate (f32 accumulator + bf16 matmul operand)
      * f32 linear-head result before the store cast
    Resident: weight (bf16, 2 buffers) + bias row.
    """
    per_b = (2 * l_pad * d_pad * bert_bytes
             + 2 * s_pad * c_pad * out_bytes
             + 2 * s_pad * 128 * 4
             + s_pad * l_pad * 6
             + s_pad * d_pad * 6
             + s_pad * c_pad * 4)
    resident = 2 * d_pad * c_pad * 2 + 2 * c_pad * 4
    avail = max(budget_bytes - resident, per_b)
    cap = max(1, min(bs, avail // per_b))

    divisors = [d for d in range(1, bs + 1) if bs % d == 0 and d <= cap] or [1]

    def grid_len(d):
        return bs // d

    # Prefer an even grid length >= 4 (>= 2 pipelined steps per v7x core),
    # then any grid length >= 2, then the largest feasible tile.
    pref4 = [d for d in divisors if grid_len(d) >= 4 and grid_len(d) % 2 == 0]
    pref2 = [d for d in divisors if grid_len(d) >= 2]
    if pref4:
        return int(max(pref4))
    if pref2:
        return int(max(pref2))
    return int(max(divisors))


def _ctx_embeds_kernel(bounds_ref, bert_ref, w_ref, b_ref, out_ref):
    # bounds_ref: (B, S, 2)  int32           VMEM
    # bert_ref:   (B, L, D)  f32 (or bf16)   VMEM
    # w_ref:      (D, C)     bfloat16        VMEM (transposed from PyTorch (C, D))
    # b_ref:      (1, C)     float32         VMEM
    # out_ref:    (B, S, C)  out dtype       VMEM
    bounds = bounds_ref[...]                                  # (B, S, 2)
    B, S, _ = bounds.shape
    L = bert_ref.shape[1]
    D = bert_ref.shape[2]
    C = w_ref.shape[1]

    starts = bounds[:, :, 0:1]                                # (B, S, 1) int32
    ends = bounds[:, :, 1:2]                                  # (B, S, 1) int32

    # Inclusive span length; clamp >= 1 so degenerate / padded spans (e.g.
    # (0, 0) padding rows) never divide by <= 0.
    counts = jnp.maximum(ends - starts + 1, 1).astype(jnp.float32)   # (B, S, 1)
    inv_counts = 1.0 / counts

    # positions[b, s, t] = t ; mask build stays int32/f32 (v5e-friendly VPU).
    positions = jax.lax.broadcasted_iota(jnp.int32, (B, S, L), dimension=2)
    in_span = (positions >= starts) & (positions <= ends)     # (B, S, L) bool
    # Fold the 1/len average directly into the mask, then cast for the MXU.
    mask = (in_span.astype(jnp.float32) * inv_counts).astype(jnp.bfloat16)

    # Cast bert to bf16 in-register (no wrapper-side HBM round trip).
    bert = bert_ref[...].astype(jnp.bfloat16)                 # (B, L, D)

    # Span averages on the MXU with f32 accumulation: (B,S,L)@(B,L,D)->(B,S,D).
    span_avg = jnp.einsum("bsl,bld->bsd", mask, bert,
                          preferred_element_type=jnp.float32)
    span_avg = span_avg.astype(jnp.bfloat16)

    # Linear head: collapse (B, S) so the MXU sees B*S rows in one matmul.
    flat = span_avg.reshape(B * S, D)                         # layout-free (S%16==0)
    out = jnp.dot(flat, w_ref[...], preferred_element_type=jnp.float32)
    out = out + b_ref[...]                                    # (B*S, C) + (1, C)
    out_ref[...] = out.reshape(B, S, C).astype(out_ref.dtype)


def get_context_embeds_head(bert_output, mention_bounds, weight, bias,
                            *, b_tile=None, out_dtype=jnp.float32):
    """all_avg_linear head.

    bert_output:    (bs, L, D) float
    mention_bounds: (bs, S, 2) int32, inclusive [start, end] with end < L
    weight:         (C, D) float  (PyTorch nn.Linear layout)
    bias:           (C,)   float
    returns:        (bs, S, C) out_dtype
    """
    if mention_bounds.shape[0] == 0:
        # forward() early-returns mention_bounds when the batch is empty.
        return mention_bounds

    bs, L, D = bert_output.shape
    S = mention_bounds.shape[1]
    C = weight.shape[0]

    # TPU-friendly shapes: S to a multiple of 16 (bf16 packed sublanes),
    # L / D / C to lane multiples of 128.
    L_pad = _round_up(L, 128)
    D_pad = _round_up(D, 128)
    C_pad = _round_up(C, 128)
    S_pad = _round_up(S, 16)

    bert_in = bert_output if bert_output.dtype == jnp.bfloat16 \
        else bert_output.astype(jnp.float32)
    bert_bytes = jnp.dtype(bert_in.dtype).itemsize
    out_bytes = jnp.dtype(out_dtype).itemsize

    vmem_budget = _vmem_budget_bytes()
    if b_tile is None:
        b_tile = _choose_b_tile(bs, S_pad, L_pad, D_pad, C_pad,
                                bert_bytes, out_bytes, vmem_budget)
    b_tile = max(1, min(b_tile, bs))
    bs_pad = _round_up(bs, b_tile)   # == bs when b_tile divides bs (default)

    # Pad (no dtype conversion of bert here; the kernel casts in-register).
    bert_p = _maybe_pad(bert_in,
                        ((0, bs_pad - bs), (0, L_pad - L), (0, D_pad - D)))
    # Padded spans become (0, 0): count clamps to 1, results are sliced off.
    bounds_p = _maybe_pad(mention_bounds.astype(jnp.int32),
                          ((0, bs_pad - bs), (0, S_pad - S), (0, 0)))
    # Weight^T with zero-padded rows/cols; bias row padded with zeros.
    w_t = _maybe_pad(jnp.transpose(weight),
                     ((0, D_pad - D), (0, C_pad - C))).astype(jnp.bfloat16)
    b_row = _maybe_pad(bias.reshape(1, C).astype(jnp.float32),
                       ((0, 0), (0, C_pad - C)))

    grid = (bs_pad // b_tile,)
    grid_spec = pltpu.PrefetchScalarGridSpec(
        num_scalar_prefetch=0,
        grid=grid,
        in_specs=[
            pl.BlockSpec((b_tile, S_pad, 2), lambda b: (b, 0, 0)),       # bounds
            pl.BlockSpec((b_tile, L_pad, D_pad), lambda b: (b, 0, 0)),   # bert
            pl.BlockSpec((D_pad, C_pad), lambda b: (0, 0)),              # weight^T
            pl.BlockSpec((1, C_pad), lambda b: (0, 0)),                  # bias
        ],
        out_specs=pl.BlockSpec((b_tile, S_pad, C_pad), lambda b: (b, 0, 0)),
    )

    out = pl.pallas_call(
        _ctx_embeds_kernel,
        out_shape=jax.ShapeDtypeStruct((bs_pad, S_pad, C_pad), out_dtype),
        grid_spec=grid_spec,
        compiler_params=pltpu.CompilerParams(
            dimension_semantics=("parallel",),
            vmem_limit_bytes=int(vmem_budget)),
    )(bounds_p, bert_p, w_t, b_row)

    return out[:bs, :S, :C]


def _reference(bert_output, mention_bounds, weight, bias):
    """Pure-numpy f32 reference matching the PyTorch all_avg_linear path."""
    bert = np.asarray(bert_output, dtype=np.float32)
    bounds = np.asarray(mention_bounds)
    W = np.asarray(weight, dtype=np.float32)
    b = np.asarray(bias, dtype=np.float32)
    bs, L, D = bert.shape
    S = bounds.shape[1]
    C = W.shape[0]
    out = np.zeros((bs, S, C), dtype=np.float32)
    for i in range(bs):
        for s in range(S):
            st, en = int(bounds[i, s, 0]), int(bounds[i, s, 1])
            span = bert[i, st:en + 1, :]              # inclusive bounds
            avg = span.sum(axis=0) / float(en - st + 1)
            out[i, s] = avg @ W.T + b
    return out


if __name__ == "__main__":
    key = jax.random.PRNGKey(0)
    k1, k2, k3, k4, k5 = jax.random.split(key, 5)

    bs, seqlen, embed_dim = 2, 16, 32       # ctxt_output_dim = 32
    num_spans = 8
    cand_output_dim = 32

    bert_output = jax.random.normal(k1, (bs, seqlen, embed_dim), dtype=jnp.float32)

    # deterministic valid inclusive spans
    starts = jax.random.randint(k2, (bs, num_spans), 0, seqlen - 4)
    lengths = jax.random.randint(k3, (bs, num_spans), 1, 5)
    ends = jnp.clip(starts + lengths - 1, 0, seqlen - 1)
    mention_bounds = jnp.stack([starts, ends], axis=-1).astype(jnp.int32)

    # deterministic Linear(ctxt_output_dim -> cand_output_dim) params
    weight = jax.random.normal(k4, (cand_output_dim, embed_dim), dtype=jnp.float32) * 0.05
    bias = jax.random.normal(k5, (cand_output_dim,), dtype=jnp.float32) * 0.05

    out = get_context_embeds_head(bert_output, mention_bounds, weight, bias)
    out = jax.block_until_ready(out)

    ref = _reference(bert_output, mention_bounds, weight, bias)
    # bf16 MXU operands (incl. 1/len folded into the mask) with f32
    # accumulation -> relaxed tolerance vs the f32 reference.
    np.testing.assert_allclose(np.asarray(out), ref, rtol=3e-2, atol=3e-2)

    print("KERNEL_OK")
</pallas_src>

<mosaic_0001>
module attributes {stable_mosaic.version = 11 : i64} {
  func.func @_ctx_embeds_kernel(%arg0: i32, %arg1: memref<1x16x2xi32, #tpu.memory_space<vmem>>, %arg2: memref<1x128x128xf32, #tpu.memory_space<vmem>>, %arg3: memref<128x128xbf16, #tpu.memory_space<vmem>>, %arg4: memref<1x128xf32, #tpu.memory_space<vmem>>, %arg5: memref<1x16x128xf32, #tpu.memory_space<vmem>>) attributes {dimension_semantics = [#tpu.dimension_semantics<parallel>], iteration_bounds = array<i64: 2>, scalar_prefetch = 0 : i64, scratch_operands = 0 : i64, tpu.core_type = #tpu.core_type<tc>, window_params = [{transform_indices = @transform_0, window_bounds = array<i64: 1, 16, 2>}, {transform_indices = @transform_1, window_bounds = array<i64: 1, 128, 128>}, {pipeline_mode = #tpu.pipeline_mode<synchronous>, transform_indices = @transform_2, window_bounds = array<i64: 128, 128>}, {pipeline_mode = #tpu.pipeline_mode<synchronous>, transform_indices = @transform_3, window_bounds = array<i64: 1, 128>}, {transform_indices = @transform_4, window_bounds = array<i64: 1, 16, 128>}]} {
    %c0 = arith.constant 0 : index
    %c0_0 = arith.constant 0 : index
    %c0_1 = arith.constant 0 : index
    %0 = vector.load %arg1[%c0, %c0_0, %c0_1] : memref<1x16x2xi32, #tpu.memory_space<vmem>>, vector<1x16x2xi32>
    %1 = vector.extract_strided_slice %0 {offsets = [0, 0, 0], sizes = [1, 16, 1], strides = [1, 1, 1]} : vector<1x16x2xi32> to vector<1x16x1xi32>
    %2 = vector.extract_strided_slice %0 {offsets = [0, 0, 1], sizes = [1, 16, 1], strides = [1, 1, 1]} : vector<1x16x2xi32> to vector<1x16x1xi32>
    %3 = arith.subi %2, %1 : vector<1x16x1xi32>
    %c1_i32 = arith.constant 1 : i32
    %4 = vector.broadcast %c1_i32 : i32 to vector<1x16x1xi32>
    %5 = arith.addi %3, %4 : vector<1x16x1xi32>
    %c1_i32_2 = arith.constant 1 : i32
    %6 = vector.broadcast %c1_i32_2 : i32 to vector<1x16x1xi32>
    %7 = arith.maxsi %5, %6 : vector<1x16x1xi32>
    %8 = arith.sitofp %7 : vector<1x16x1xi32> to vector<1x16x1xf32>
    %cst = arith.constant 1.000000e+00 : f32
    %9 = vector.broadcast %cst : f32 to vector<1x16x1xf32>
    %10 = arith.divf %9, %8 : vector<1x16x1xf32>
    %11 = tpu.iota {dimensions = array<i32: 2>} : vector<1x16x128xi32>
    %12 = vector.broadcast %1 : vector<1x16x1xi32> to vector<1x16x128xi32>
    %13 = arith.cmpi sge, %11, %12 : vector<1x16x128xi32>
    %14 = vector.broadcast %2 : vector<1x16x1xi32> to vector<1x16x128xi32>
    %15 = arith.cmpi sle, %11, %14 : vector<1x16x128xi32>
    %16 = arith.andi %13, %15 : vector<1x16x128xi1>
    %17 = arith.extui %16 : vector<1x16x128xi1> to vector<1x16x128xi32>
    %18 = arith.sitofp %17 : vector<1x16x128xi32> to vector<1x16x128xf32>
    %19 = vector.broadcast %10 : vector<1x16x1xf32> to vector<1x16x128xf32>
    %20 = arith.mulf %18, %19 : vector<1x16x128xf32>
    %21 = arith.truncf %20 : vector<1x16x128xf32> to vector<1x16x128xbf16>
    %c0_3 = arith.constant 0 : index
    %c0_4 = arith.constant 0 : index
    %c0_5 = arith.constant 0 : index
    %22 = vector.load %arg2[%c0_3, %c0_4, %c0_5] : memref<1x128x128xf32, #tpu.memory_space<vmem>>, vector<1x128x128xf32>
    %23 = arith.truncf %22 : vector<1x128x128xf32> to vector<1x128x128xbf16>
    "tpu.trace_start"() <{level = 10 : i32, message = "bsl,bld->bsd"}> : () -> ()
    %cst_6 = arith.constant dense<0.000000e+00> : vector<1x16x128xf32>
    %24 = tpu.matmul %21, %23, %cst_6 {dimension_numbers = #tpu.dot_dimension_numbers<[2], [1], [1], [2], [0, 0, 0, 1, 1, 2], [0], [0]>} : vector<1x16x128xbf16>, vector<1x128x128xbf16>, vector<1x16x128xf32> -> vector<1x16x128xf32>
    "tpu.trace_stop"() : () -> ()
    %25 = arith.truncf %24 : vector<1x16x128xf32> to vector<1x16x128xbf16>
    %26 = vector.shape_cast %25 : vector<1x16x128xbf16> to vector<16x128xbf16>
    %c0_7 = arith.constant 0 : index
    %c0_8 = arith.constant 0 : index
    %27 = vector.load %arg3[%c0_7, %c0_8] : memref<128x128xbf16, #tpu.memory_space<vmem>>, vector<128x128xbf16>
    %cst_9 = arith.constant dense<0.000000e+00> : vector<16x128xf32>
    %28 = tpu.matmul %26, %27, %cst_9 {dimension_numbers = #tpu.dot_dimension_numbers<[1], [0], [0], [1], [0, 0, 1, 1], [], []>} : vector<16x128xbf16>, vector<128x128xbf16>, vector<16x128xf32> -> vector<16x128xf32>
    %c0_10 = arith.constant 0 : index
    %c0_11 = arith.constant 0 : index
    %29 = vector.load %arg4[%c0_10, %c0_11] : memref<1x128xf32, #tpu.memory_space<vmem>>, vector<1x128xf32>
    %30 = vector.broadcast %29 : vector<1x128xf32> to vector<16x128xf32>
    %31 = arith.addf %28, %30 : vector<16x128xf32>
    %32 = vector.shape_cast %31 : vector<16x128xf32> to vector<1x16x128xf32>
    %c0_12 = arith.constant 0 : index
    %c0_13 = arith.constant 0 : index
    %c0_14 = arith.constant 0 : index
    %33 = vector.load %arg5[%c0_12, %c0_13, %c0_14] : memref<1x16x128xf32, #tpu.memory_space<vmem>>, vector<1x16x128xf32>
    tpu.vector_store %arg5[%c0_12, %c0_13, %c0_14], %32 {strides = array<i32>} : memref<1x16x128xf32, #tpu.memory_space<vmem>>, vector<1x16x128xf32>,
    return
  }
  func.func @transform_0(%arg0: i32) -> (i32, i32, i32) {
    %c0_i32 = arith.constant 0 : i32
    %c0_i32_0 = arith.constant 0 : i32
    %c0_i32_1 = arith.constant 0 : i32
    return %arg0, %c0_i32, %c0_i32_0 : i32, i32, i32
  }
  func.func @transform_1(%arg0: i32) -> (i32, i32, i32) {
    %c0_i32 = arith.constant 0 : i32
    %c0_i32_0 = arith.constant 0 : i32
    %c0_i32_1 = arith.constant 0 : i32
    return %arg0, %c0_i32, %c0_i32_0 : i32, i32, i32
  }
  func.func @transform_2(%arg0: i32) -> (i32, i32) {
    %c0_i32 = arith.constant 0 : i32
    %c0_i32_0 = arith.constant 0 : i32
    %c0_i32_1 = arith.constant 0 : i32
    return %c0_i32, %c0_i32_0 : i32, i32
  }
  func.func @transform_3(%arg0: i32) -> (i32, i32) {
    %c0_i32 = arith.constant 0 : i32
    %c0_i32_0 = arith.constant 0 : i32
    %c0_i32_1 = arith.constant 0 : i32
    return %c0_i32, %c0_i32_0 : i32, i32
  }
  func.func @transform_4(%arg0: i32) -> (i32, i32, i32) {
    %c0_i32 = arith.constant 0 : i32
    %c0_i32_0 = arith.constant 0 : i32
    %c0_i32_1 = arith.constant 0 : i32
    return %arg0, %c0_i32, %c0_i32_0 : i32, i32, i32
  }
}

</mosaic_0001>

<bundles_post_ra>
// kernel: tpu_custom_call.1
= control target key start
LH: loop header
LB: loop body
LE: loop exit
PB: predicated region body
PF: predicated region fallthrough
CT: control target
= control target key end

     0   :  { %9 = vsyncpa [#allocation3], 0  ;;  %s1158_s0 = inlined_call_operand.vmem [shape: s32[2,16,2], index: 0, kind: input, shape index: {}]   ;;  %s1159_s1 = inlined_call_operand.hbm [shape: f32[2,128,128], index: 1, kind: input, shape index: {}]   ;;  %s1160_s2 = inlined_call_operand.hbm [shape: bf16[128,128], index: 2, kind: input, shape index: {}]   ;;  %s1161_s3 = inlined_call_operand.vmem [shape: f32[1,128], index: 3, kind: input, shape index: {}]   ;;  %s1162_s4 = inlined_call_operand.hbm [shape: f32[2,16,128], index: 4, kind: output, shape index: {}]  }
   0x1   :  { %11 = vsyncpa [#allocation3 + $0x1], 0 }
   0x2   :  { %12 = vsyncpa [#allocation6], 0 }
   0x3   :  { %13 = vsyncpa [#allocation4], 0 }
   0x4   :  { %15 = vsyncpa [#allocation4 + $0x1], 0  ;;  %s934_s15 = smov 0   ;;  %s936_s16 = smov 0  }
   0x5   :  { %s938_s17 = smov 0   ;;  %s940_s18 = smov 0  }
   0x6 LB: > { %s955_s19 = sadd.s32 4294967295, %s893_s18   ;;  %s598_s20 = sadd.s32 4294967294, %s893_s18   ;;  %s893_s18 = sphi %s940_s18, %s1184_s18   ;;  %s889_s17 = sphi %s938_s17, %s1183_s17   ;;  %s885_s16 = sphi %s936_s16, %s1182_s16   ;;  %s881_s15 = sphi %s934_s15, %s1181_s15  }
   0x7   : > { %p67_p0 = scmp.ne.s32.totalorder %s885_s16, %s881_s15  ;;  %p1163_p1 = scmp.eq.s32.totalorder %s955_s19, 0 }
   0x8   : > { %p139_p3 = scmp.eq.s32.totalorder %s598_s20, 1  ;;  %p599_p5 = scmp.ge.s32.totalorder %s893_s18, 1 }
   0x9   : > { %p964_p4 = por %p1163_p1, %p67_p0  ;;  %p146_p7 = scmp.lt.s32.totalorder %s893_s18, 3 }
   0xa   : > { %p969_p6 = por %p139_p3, %p67_p0  ;;  %s895_s24 = smov [#allocation5]  }
   0xb   : > { %s1167_s21 = scalar_select %p964_p4, 1, 0 }
   0xc   : > { %s1168_s22 = scalar_select %p969_p6, 1, 0 }
   0xd   : > { %p974_p8 = pnand %p599_p5, %p146_p7  ;;  %s158_s25 = sshll.u32 %s895_s24, 4  ;;  %s159_s25 = int_to_ptr.vmem [resolvable:$true] %s158_s25 }
   0xe   : > { %s988_s27 = sadd.s32 1, %s893_s18   ;;  %s54_s28 = sadd.s32 1, %s889_s17 }
   0xf   : > { %s1169_s23 = scalar_select %p974_p8, 1, 0 }
  0x10   : > { %p696_p9 = pneg %p974_p8  ;;  %s51_s29 = ssub.s32 %s893_s18, %s988_s27 }
  0x11   : > { %s782_s30 = scalar_lea.vmem %s159_s25, 1024  ;;  %p790_p5 = scmp.lt.s32.totalorder %s159_s25, %s159_s25 }
  0x12   : > { %p983_p11 = pnand %p696_p9, %p1163_p1  ;;  %p783_p13 = scmp.ne.s32.totalorder %s159_s25, %s782_s30 }
  0x13   : > { %p791_p7 = scmp.lt.s32.totalorder %s782_s30, %s782_s30 }
  0x14   : > { %p773_p12 = pneg %p983_p11 }
  0x15   : > { %p792_p10 = por %p791_p7, %p790_p5 }
  0x16   : > { %p785_p0 = pnand %p783_p13, %p773_p12 }
  0x18   : > { %p786_p3 = pneg %p785_p0 }
  0x1a   : > { %p793_p2 = pnand %p792_p10, %p786_p3 }
  0x1c   : > { %796 = shalt.err (!%p793_p2)
}
  0x1d   : > { %s896_s5 = smov 64   ;;  %s897_s6 = smov 4  }
  0x1e   : > { %699 = dma.hbm_to_vmem [thread:$0]  (!%p983_p11), %s1160_s2, 1024, %s159_s25, [#allocation6], %s896_s5, %s896_s5, %s897_s6  }
  0x1f   : > { %p52_p9 = scmp.eq.s32.totalorder %s51_s29, 0  ;;  %p61_p12 = scmp.ne.s32.totalorder %s889_s17, %s885_s16 }
  0x20   : > { %p62_p10 = scmp.eq.s32.totalorder %s893_s18, 0  ;;  %p709_p2 = scmp.lt.s32.totalorder %s893_s18, 2 }
  0x21   : > { %s1005_s9 = scalar_select %p52_p9, %s889_s17, %s54_s28  }
  0x22   : > { %p63_p13 = por %p62_p10, %p61_p12  ;;  %p1171_p0 = scmp.eq.s32.totalorder %s955_s19, 1 }
  0x23   : > { %s183_s11 = sand.u32 1, %s889_s17   ;;  %s627_s12 = sshll.u32 %s893_s18, 11 }
  0x24   : > { %p1009_p3 = por %p1171_p0, %p61_p12  ;;  %s602_s13 = sshll.u32 %s183_s11, 7 }
  0x25   : > { %s1018_s24 = scalar_lea.hbm %s1159_s1, %s627_s12  ;;  %s187_s25 = scalar_lea.vmem [#allocation2], %s602_s13 }
  0x26   : > { %s1172_s10 = scalar_select %p1009_p3, 1, 0 }
  0x27   : > { %s194_s26 = sshll.u32 %s187_s25, 4  ;;  %p1020_p11 = pnand %p709_p2, %p63_p13  ;;  %s1024_s26 = int_to_ptr.vmem [resolvable:$true] %s194_s26 }
  0x28   : > { %s1026_s29 = scalar_lea.sflag [#allocation3], %s183_s11  ;;  %s797_s30 = scalar_lea.hbm %s1018_s24, 2048 }
  0x29   : > { %p798_p5 = scmp.ne.s32.totalorder %s1018_s24, %s797_s30  ;;  %p799_p7 = pneg %p1020_p11 }
  0x2a   : > { %s802_s7 = scalar_lea.hbm %s1159_s1, 4096  ;;  %p803_p10 = scmp.lt.s32.totalorder %s1018_s24, %s1159_s1 }
  0x2b   : > { %p800_p9 = pnand %p799_p7, %p798_p5  ;;  %p804_p2 = scmp.lt.s32.totalorder %s802_s7, %s797_s30 }
  0x2d   : > { %p801_p12 = pneg %p800_p9  ;;  %p805_p13 = por %p804_p2, %p803_p10 }
  0x2f   : > { %p806_p0 = pnand %p805_p13, %p801_p12 }
  0x31   : > { %809 = shalt.err (!%p806_p0)
}
  0x32   : > { %s810_s11 = scalar_lea.vmem %s1024_s26, 2048  ;;  %s898_s13 = smov [#allocation2]  }
  0x33   : > { %p811_p1 = scmp.ne.s32.totalorder %s1024_s26, %s810_s11  ;;  %s815_s14 = sshll.u32 %s898_s13, 4  ;;  %s816_s14 = int_to_ptr.vmem [resolvable:$false] %s815_s14 }
  0x34   : > { %s817_s20 = scalar_lea.vmem %s816_s14, 4096  ;;  %p818_p9 = scmp.lt.s32.totalorder %s1024_s26, %s816_s14 }
  0x35   : > { %p813_p6 = pnand %p811_p1, %p799_p7  ;;  %p819_p3 = scmp.lt.s32.totalorder %s817_s20, %s810_s11 }
  0x37   : > { %p814_p5 = pneg %p813_p6  ;;  %p820_p4 = por %p819_p3, %p818_p9 }
  0x39   : > { %p821_p8 = pnand %p820_p4, %p814_p5 }
  0x3b   : > { %824 = shalt.err (!%p821_p8)
}
  0x3c   : > { %s899_s25 = smov 128   ;;  %s900_s30 = smov 8  }
  0x3d   : > { %703 = dma.hbm_to_vmem [thread:$0]  (!%p1020_p11), %s1018_s24, 2048, %s1024_s26, %s1026_s29, %s899_s25, %s899_s25, %s900_s30  }
  0x3e   : > { %p1174_p1 = scmp.ne.s32.totalorder %s1169_s23, 0 }
  0x3f   : > { %s1050_s5 = sand.u32 (!%p1174_p1), 1, %s885_s16   ;;  %p1175_p4 = scmp.ne.s32.totalorder (!%p1174_p1), %s1167_s21, 0 }
  0x40   : > { %206 = sbr.rel (%p1174_p1) target bundleno = 761 (0x2f9), region = 36  ;;  %s606_s6 = sshll.u32 (!%p1174_p1), %s1050_s5, 7 }
  0x41   : > { %s209_s7 = scalar_lea.sflag (!%p1174_p1), [#allocation3], %s1050_s5  ;;  %s1054_s8 = scalar_lea.vmem (!%p1174_p1), [#allocation2], %s606_s6 }
  0x45   : > { %868 = dma.done.wait (%p1175_p4), %s209_s7, 2048  }
  0x46   : > { %870 = vsyncadd (%p1175_p4), %s209_s7, 4294965248  ;;  %p1176_p6 = scmp.eq.s32.totalorder %s955_s19, 0 }
  0x48   : > { %872 = dma.done.wait (%p1176_p6), [#allocation6], 1024   ;;  %p1177_p8 = pmov %p1176_p6 }
  0x49   : > { %p246_p3 = scmp.lt.s32.totalorder %s955_s19, 1  ;;  %v901_v0 = vmov 0   ;;  %v902_v3 = vmov 1   ;;  %s903_s29 = smov 1   ;;  %v323_v4 = vld [vmem:[%s1054_s8 + $0x70] sm:$0xff]  ;;  %v324_v5 = vld [vmem:[%s1054_s8 + $0x78] sm:$0xff]  ;;  %v272_v48 = vlaneseq }
  0x4a   : > { %874 = vsyncadd (%p1177_p8), [#allocation6], 4294966272  ;;  %756 = vset.pattern.permute.xlu1 %v901_v0  ;;  %757 = vset.pattern.permute.xlu0 %v902_v3  ;;  %v321_v6 = vld [vmem:[%s1054_s8 + $0x60] sm:$0xff]  ;;  %v904_v7 = vmov 0.0   ;;  %v332_v8 = vpack.c.bf16 %v324_v5, %v323_v4  ;;  %v322_v9 = vld [vmem:[%s1054_s8 + $0x68] sm:$0xff]  ;;  %vm905_vm2 = vmmov 0  }
  0x4b   : > { %s247_s23 = scalar_select %p246_p3, %s955_s19, 1  ;;  %648 = vmatprep.subr.bf16.mxu0 %v904_v7  ;;  %668 = vmatprep.subr.bf16.mxu1 %v904_v7  ;;  %v331_v10 = vpack.c.bf16 %v322_v9, %v321_v6  ;;  %v319_v11 = vld [vmem:[%s1054_s8 + $0x50] sm:$0xff]  ;;  %v320_v12 = vld [vmem:[%s1054_s8 + $0x58] sm:$0xff]  ;;  %v317_v14 = vld [vmem:[%s1054_s8 + $0x40] sm:$0xff]  ;;  %v273_v50 = vand.u32 127, %v272_v48 }
  0x4c   : > { %649 = vmatpush3.bf16.msra.mxu0 %v332_v8  ;;  %v330_v13 = vpack.c.bf16 %v320_v12, %v319_v11  ;;  %v318_v15 = vld [vmem:[%s1054_s8 + $0x48] sm:$0xff]  ;;  %v315_v17 = vld [vmem:[%s1054_s8 + $0x30] sm:$0xff]  ;;  %v316_v18 = vld [vmem:[%s1054_s8 + $0x38] sm:$0xff]  ;;  %664 = vmatprep.mubr.msk.bf16.mxu0 %vm905_vm2, %v904_v7  ;;  %s608_s12 = sshll.u32 %s1050_s5, 4  ;;  %s629_s25 = sshll.u32 %s955_s19, 8 }
  0x4d   : > { %s628_s24 = sshll.u32 %s247_s23, 4  ;;  %650 = vmatprep.subr.bf16.mxu0 %v904_v7  ;;  %v329_v16 = vpack.c.bf16 %v318_v15, %v317_v14  ;;  %v328_v19 = vpack.c.bf16 %v316_v18, %v315_v17  ;;  %v313_v20 = vld [vmem:[%s1054_s8 + $0x20] sm:$0xff]  ;;  %v314_v21 = vld [vmem:[%s1054_s8 + $0x28] sm:$0xff]  ;;  %v311_v33 = vld [vmem:[%s1054_s8 + $0x10] sm:$0xff]  ;;  %684 = vmatprep.mubr.msk.bf16.mxu1 %vm905_vm2, %v904_v7  ;;  %s245_s14 = scalar_lea.vmem [#allocation7], %s608_s12 }
  0x4e   : > { %s250_s21 = scalar_lea.vmem %s1158_s0, %s628_s24  ;;  %v327_v22 = vpack.c.bf16 %v314_v21, %v313_v20  ;;  %v312_v34 = vld [vmem:[%s1054_s8 + $0x18] sm:$0xff]  ;;  %v309_v36 = vld [vmem:[%s1054_s8] sm:$0xff]  ;;  %v310_v37 = vld [vmem:[%s1054_s8 + $0x8] sm:$0xff]  ;;  %s503_s20 = sshll.u32 %s245_s14, 4  ;;  %s1110_s20 = int_to_ptr.vmem [resolvable:$true] %s503_s20 }
  0x4f   : > { %v252_v1 = vld [vmem:[%s250_s21] sm:$0xff]  ;;  %v253_v2 = vld [vmem:[%s250_s21 + $0x8] sm:$0xff]  ;;  %v326_v35 = vpack.c.bf16 %v312_v34, %v311_v33  ;;  %v325_v39 = vpack.c.bf16 %v310_v37, %v309_v36  ;;  %v759_v41 = vld [vmem:[#allocation5 + $0x38] sm:$0xff]   ;;  %s1115_s7 = scalar_lea.hbm %s1162_s4, %s629_s25  ;;  %s490_s8 = scalar_lea.sflag [#allocation4], %s1050_s5 }
  0x50   : > { %254 = vrot.lane.b32.xlu0 %v252_v1, %s903_s29  ;;  %275 = vperm.xlu1 %756, %v252_v1   ;;  %v760_v42 = vld [vmem:[#allocation5 + $0x30] sm:$0xff]   ;;  %v761_v43 = vld [vmem:[#allocation5 + $0x28] sm:$0xff]   ;;  %v762_v44 = vld [vmem:[#allocation5 + $0x20] sm:$0xff]   ;;  %s825_s23 = scalar_lea.vmem %s1110_s20, 256  ;;  %p1178_p7 = scmp.ne.s32.totalorder %s1172_s10, 0 }
  0x51   : > { %651 = vmatpush3.bf16.msra.mxu0 %v331_v10  ;;  %669 = vmatpush3.bf16.msra.mxu1 %v759_v41  ;;  %v763_v45 = vld [vmem:[#allocation5 + $0x18] sm:$0xff]   ;;  %v764_v46 = vld [vmem:[#allocation5 + $0x10] sm:$0xff]   ;;  %v765_v60 = vld [vmem:[#allocation5 + $0x8] sm:$0xff]   ;;  %p826_p11 = scmp.ne.s32.totalorder %s1110_s20, %s825_s23  ;;  %s906_s19 = smov [#allocation7]  }
  0x52   : > { %652 = vmatprep.subr.bf16.mxu0 %v904_v7  ;;  %670 = vmatprep.subr.bf16.mxu1 %v904_v7  ;;  %v766_v61 = vld [vmem:[#allocation5] sm:$0xff]   ;;  %s829_s24 = sshll.u32 %s906_s19, 4  ;;  %s830_s24 = int_to_ptr.vmem [resolvable:$false] %s829_s24 }
  0x53   : > { %p827_p12 = pnand %p826_p11, %p1178_p7  ;;  %s831_s26 = scalar_lea.vmem %s830_s24, 512 }
  0x54   : > { %256 = vrot.lane.b32.xlu0 %v253_v2, %s903_s29  ;;  %278 = vperm.xlu1 %756, %v253_v2   ;;  %p832_p2 = scmp.lt.s32.totalorder %s1110_s20, %s830_s24  ;;  %p833_p13 = scmp.lt.s32.totalorder %s831_s26, %s825_s23 }
  0x55   : > { %653 = vmatpush3.bf16.msra.mxu0 %v330_v13  ;;  %671 = vmatpush3.bf16.msra.mxu1 %v760_v42  ;;  %p828_p10 = pneg %p827_p12 }
  0x56   : > { %654 = vmatprep.subr.bf16.mxu0 %v904_v7  ;;  %672 = vmatprep.subr.bf16.mxu1 %v904_v7  ;;  %p834_p0 = por %p833_p13, %p832_p2 }
  0x58   : > { %758 = vset.pattern.permute.xlu1 %v902_v3  ;;  %283 = vperm.xlu0 %757, %v252_v1   ;;  %v613_v3 = vld [vmem:[%s1161_s3] ss:$0 sm:$0xff]  ;;  %p835_p5 = pnand %p834_p0, %p828_p10 }
  0x59   : > { %286 = vperm.xlu1 %758, %v253_v2   ;;  %655 = vmatpush3.bf16.msra.mxu0 %v329_v16 }
  0x5a   : > { %656 = vmatprep.subr.bf16.mxu0 %v904_v7  ;;  %673 = vmatpush3.bf16.msra.mxu1 %v761_v43 }
  0x5b   : > { %674 = vmatprep.subr.bf16.mxu1 %v904_v7 }
  0x5d   : > { %657 = vmatpush3.bf16.msra.mxu0 %v328_v19 }
  0x5e   : > { %658 = vmatprep.subr.bf16.mxu0 %v904_v7  ;;  %675 = vmatpush3.bf16.msra.mxu1 %v762_v44 }
  0x5f   : > { %676 = vmatprep.subr.bf16.mxu1 %v904_v7 }
  0x61   : > { %659 = vmatpush3.bf16.msra.mxu0 %v327_v22 }
  0x62   : > { %660 = vmatprep.subr.bf16.mxu0 %v904_v7  ;;  %677 = vmatpush3.bf16.msra.mxu1 %v763_v45 }
  0x63   : > { %678 = vmatprep.subr.bf16.mxu1 %v904_v7 }
  0x65   : > { %661 = vmatpush3.bf16.msra.mxu0 %v326_v35 }
  0x66   : > { %662 = vmatprep.subr.bf16.mxu0 %v904_v7  ;;  %679 = vmatpush3.bf16.msra.mxu1 %v764_v46 }
  0x67   : > { %680 = vmatprep.subr.bf16.mxu1 %v904_v7 }
  0x69   : > { %663 = vmatpush3.bf16.msra.mxu0 %v325_v39 }
  0x6a   : > { %681 = vmatpush3.bf16.msra.mxu1 %v765_v60 }
  0x6b   : > { %682 = vmatprep.subr.bf16.mxu1 %v904_v7 }
  0x6e   : > { %683 = vmatpush3.bf16.msra.mxu1 %v766_v61 }
  0xc2   : > { %v255_v23 = vpop.permute.xlu0 %254 }
  0xc3   : > { %v258_v24 = vsub.s32 %v252_v1, %v255_v23 }
  0xc5   : > { %v260_v25 = vadd.s32 1, %v258_v24 }
  0xc6   : > { %v257_v26 = vpop.permute.xlu0 %256 }
  0xc7   : > { %vm262_vm0 = vcmp.gt.s32.totalorder %v260_v25, 1  ;;  %v259_v27 = vsub.s32 %v253_v2, %v257_v26 }
  0xc8   : > { %v263_v28 = vsel %vm262_vm0, %v260_v25, 1 }
  0xc9   : > { %v266_v29 = vcvt.s32.f32 %v263_v28  ;;  %v261_v30 = vadd.s32 1, %v259_v27 }
  0xcb   : > { %767 = vrcp.f32 %v266_v29  ;;  %vm264_vm1 = vcmp.gt.s32.totalorder %v261_v30, 1  ;;  %v276_v47 = vpop.permute.xlu1 %275 }
  0xcc   : > { %v265_v31 = vsel %vm264_vm1, %v261_v30, 1  ;;  %vm280_vm3 = vcmp.ge.s32.totalorder %v273_v50, %v276_v47 }
  0xcd   : > { %v267_v32 = vcvt.s32.f32 %v265_v31 }
  0xcf   : > { %769 = vrcp.f32 %v267_v32  ;;  %v279_v49 = vpop.permute.xlu1 %278 }
  0xd0   : > { %vm281_vm5 = vcmp.ge.s32.totalorder %v273_v50, %v279_v49 }
  0xd3   : > { %v284_v51 = vpop.permute.xlu0 %283 }
  0xd4   : > { %v287_v52 = vpop.permute.xlu1 %286  ;;  %vm288_vm4 = vcmp.le.s32.totalorder %v273_v50, %v284_v51 }
  0xd5   : > { %vm289_vm6 = vcmp.le.s32.totalorder %v273_v50, %v287_v52  ;;  %vm290_vm7 = vmand %vm280_vm3, %vm288_vm4 }
  0xd6   : > { %vm291_vm8 = vmand %vm281_vm5, %vm289_vm6  ;;  %v611_v54 = vsel %vm290_vm7, 1.0, %v904_v7 }
  0xd7   : > { %v612_v55 = vsel %vm291_vm8, 1.0, %v904_v7 }
  0xd8   : > { %v768_v38 = vpop.eup %767 }
  0xd9   : > { %298 = vperm.xlu1 %758, %v768_v38  }
  0xdc   : > { %v770_v40 = vpop.eup %769 }
  0xdd   : > { %303 = vperm.xlu0 %757, %v770_v40  }
 0x154   : > { %v299_v53 = vpop.permute.xlu1 %298 }
 0x155   : > { %v306_v57 = vmul.f32 %v611_v54, %v299_v53 }
 0x158   : > { %v304_v56 = vpop.permute.xlu0 %303 }
 0x159   : > { %v307_v58 = vmul.f32 %v612_v55, %v304_v56 }
 0x15b   : > { %v308_v59 = vpack.c.bf16 %v307_v58, %v306_v57 }
 0x15d   : > { %665 = vmatmul.mubr.bf16.vlgmr.msra.gmra.mxu0 %v308_v59 }
 0x21d   : > { %v367_v62 = vpop.f32.mrf.mxu0 }
 0x21f   : > { %v666_v63 = vpop.f32.mrf.mxu0 }
 0x221   : > { %v370_v0 = vpop.f32.mrf.mxu0 }
 0x222   : > { %v374_v1 = vpack.c.bf16 %v370_v0, %v367_v62 }
 0x223   : > { %v667_v2 = vpop.f32.mrf.mxu0 }
 0x224   : > { %685 = vmatmul.mubr.bf16.vlgmr.msra.gmra.mxu1 %v374_v1 }
 0x2e4   : > { %v480_v4 = vpop.f32.mrf.mxu1 }
 0x2e5   : > { %v481_v5 = vadd.f32 %v613_v3, %v480_v4 }
 0x2e6   : > { %v686_v6 = vpop.f32.mrf.mxu1 }
 0x2e7   : > { %487 = vst [vmem:[%s245_s14] sm:$0xff] %v481_v5 }
 0x2e8   : > { %v483_v7 = vpop.f32.mrf.mxu1 }
 0x2e9   : > { %v484_v8 = vadd.f32 %v613_v3, %v483_v7 }
 0x2ea   : > { %v687_v9 = vpop.f32.mrf.mxu1 }
 0x2eb   : > { %488 = vst [vmem:[%s245_s14 + $0x8] sm:$0xff] %v484_v8 }
 0x2ec   : > { %838 = shalt.err (!%p835_p5)
}
 0x2ed   : > { %s839_s28 = scalar_lea.hbm %s1115_s7, 256  ;;  %s843_s12 = scalar_lea.hbm %s1162_s4, 512 }
 0x2ee   : > { %p840_p9 = scmp.ne.s32.totalorder %s1115_s7, %s839_s28  ;;  %p844_p6 = scmp.lt.s32.totalorder %s1115_s7, %s1162_s4 }
 0x2ef   : > { %p845_p8 = scmp.lt.s32.totalorder %s843_s12, %s839_s28 }
 0x2f0   : > { %p841_p1 = pnand %p840_p9, %p1178_p7 }
 0x2f1   : > { %p846_p3 = por %p845_p8, %p844_p6 }
 0x2f2   : > { %p842_p4 = pneg %p841_p1 }
 0x2f4   : > { %p847_p11 = pnand %p846_p3, %p842_p4 }
 0x2f6   : > { %850 = shalt.err (!%p847_p11)
}
 0x2f7   : > { %s907_s14 = smov 128   ;;  %s908_s25 = smov 8  }
 0x2f8   : > { %694 = dma.vmem_to_hbm [thread:$0]  (%p1178_p7), %s1110_s20, 256, %s1115_s7, %s490_s8, %s907_s14, %s907_s14, %s908_s25  }
 0x2f9 PF: > { %s518_s30 = sand.u32 1, %s881_s15   ;;  %p1179_p12 = scmp.ne.s32.totalorder %s1168_s22, 0 }
 0x2fa   : > { %p1180_p10 = scmp.ge.s32.totalorder %s893_s18, 2  ;;  %s519_s6 = scalar_lea.sflag [#allocation4], %s518_s30 }
 0x2fc   : > { %p705_p2 = pnand %p1180_p10, %p1179_p12 }
 0x2fe   : > { %p706_p13 = pneg %p705_p2 }
 0x300   : > { %876 = dma.done.wait (%p706_p13), %s519_s6, 256  }
 0x301   : > { %878 = vsyncadd (%p706_p13), %s519_s6, 4294967040  ;;  %p18_p0 = scmp.ge.s32.totalorder %s988_s27, 4   ;;  %s1181_s15 = smov %s885_s16 }
 0x302   : > { %s1182_s16 = smov %s889_s17  ;;  %s1183_s17 = smov %s1005_s9 }
 0x303   : > { %s1184_s18 = smov %s988_s27  ;;  %20 = sbr.rel (!%p18_p0) target bundleno = 6 (0x6), region = 88 }
 0x308   :  { %524 = vsyncpa [#allocation3], 1 }
 0x309   :  { %526 = vsyncpa [#allocation3 + $0x1], 1 }
 0x30a   :  { %527 = vsyncpa [#allocation6], 1 }
 0x30b   :  { %528 = vsyncpa [#allocation4], 1 }
 0x30c   :  { %530 = vsyncpa [#allocation4 + $0x1], 1 }

</bundles_post_ra>
